<compile_context>
chip_gen: v5e
topology: v5e:2x2
jax: 0.10.0
libtpu: 0.0.40
codegen_flags: <defaults>
</compile_context>

<pallas_src>
import functools

import jax
import jax.numpy as jnp
from jax.experimental import pallas as pl
from jax.experimental.pallas import tpu as pltpu


def _round_up(x, m):
    return (x + m - 1) // m * m


# ---------------------------------------------------------------------------
# Tile selection (avoid padding whenever the shape already divides).
# ---------------------------------------------------------------------------
def _pick_m_tile(M):
    """Returns (tm, M_pad). Prefers a divisor of round_up(M, 8); pads only
    when unavoidable."""
    M8 = _round_up(M, 8)
    if M8 <= 1024:
        return M8, M8
    for tm in (1024, 896, 768, 640, 512, 384, 256, 128):
        if M8 % tm == 0:
            return tm, M8
    tm = 512
    return tm, _round_up(M8, tm)


def _pick_k_tile(K, max_tk):
    """Returns (tk, K_pad). Full-dim block when K is small; otherwise the
    largest lane-aligned divisor of K <= max_tk; pads only as a fallback."""
    if K <= max_tk:
        return K, K
    for tk in (2048, 1792, 1536, 1280, 1024, 768, 640, 512, 384, 256, 128):
        if tk <= max_tk and K % tk == 0:
            return tk, K
    tk = min(1024, max_tk)
    return tk, _round_up(K, tk)


# ---------------------------------------------------------------------------
# Kernel 1: hoisted, fused input projection
#   proj = X2d @ Wcomb + [bmx | bx+bh]
#   Wcomb = [Wmx^T | Wx^T] padded to (K_pad, 5*Hp).  K-tiled streaming matmul,
#   accumulating directly into the resident output block.
# ---------------------------------------------------------------------------
def _proj_matmul_kernel(cast_bf16, x_ref, w_ref, b_ref, o_ref):
    @pl.when(pl.program_id(1) == 0)
    def _():
        # Initialize the resident output block with the (broadcast) bias.
        o_ref[...] = jnp.broadcast_to(b_ref[...], o_ref.shape)

    xt = x_ref[...]
    if cast_bf16:
        xt = xt.astype(jnp.bfloat16)   # bf16 x bf16 -> f32 on the MXU
    o_ref[...] += jnp.dot(xt, w_ref[...], preferred_element_type=jnp.float32)


def _projection_matmul(x2d, w, bias, tk):
    """x2d: (M, K) f32, w: (K_pad, N) f32/bf16 (N mult of 128, K_pad mult of tk),
    bias: (1, N) f32.  Returns (M, N) f32 = x2d @ w + bias."""
    M, K = x2d.shape
    K_pad, N = w.shape
    assert N % 128 == 0 and K_pad % tk == 0
    cast_bf16 = (w.dtype == jnp.bfloat16)

    tm, M_pad = _pick_m_tile(M)
    if M_pad != M or K_pad != K:
        x2d = jnp.pad(x2d, ((0, M_pad - M), (0, K_pad - K)))

    out = pl.pallas_call(
        functools.partial(_proj_matmul_kernel, cast_bf16),
        out_shape=jax.ShapeDtypeStruct((M_pad, N), jnp.float32),
        grid_spec=pltpu.PrefetchScalarGridSpec(
            num_scalar_prefetch=0,
            grid=(M_pad // tm, K_pad // tk),
            in_specs=[pl.BlockSpec((tm, tk), lambda i, k: (i, k)),
                      pl.BlockSpec((tk, N), lambda i, k: (k, 0)),
                      pl.BlockSpec((1, N), lambda i, k: (0, 0))],
            out_specs=pl.BlockSpec((tm, N), lambda i, k: (i, 0))),
        compiler_params=pltpu.CompilerParams(
            dimension_semantics=("parallel", "arbitrary"),
            vmem_limit_bytes=32 * 1024 * 1024),
    )(x2d, w, bias)
    if M_pad != M:
        out = out[:M]
    return out


# ---------------------------------------------------------------------------
# Kernel 2: the recurrence (time-blocked) + regressor head on the last block.
# ---------------------------------------------------------------------------
def _mlstm_rec_kernel(Hp, Tc, T,
                      proj_ref,
                      wmh_ref, bmh_ref, wh_ref,
                      w1_ref, b1_ref, w2_ref, b2_ref,
                      h_out_ref, c_out_ref, y_ref,
                      h_scr, c_scr):
    blk = pl.program_id(0)

    # hidden_states=None -> zero-initialized (h, c)
    @pl.when(blk == 0)
    def _():
        h_scr[...] = jnp.zeros_like(h_scr)
        c_scr[...] = jnp.zeros_like(c_scr)

    B = h_scr.shape[0]
    # Tiny (1 vreg) hoisted broadcast; weights are deliberately NOT hoisted
    # (reading wmh/wh refs inside the unrolled loop avoids vreg spills).
    bmh = jnp.broadcast_to(bmh_ref[...], (B, Hp))

    def step(tt, carry):
        h, c = carry
        pt = proj_ref[tt]                       # (B, 5Hp), biases pre-folded
        xm_t = pt[:, :Hp]                       # x@Wmx^T + bmx
        m = xm_t * (jnp.dot(h, wmh_ref[...],
                            preferred_element_type=jnp.float32) + bmh)
        gates = pt[:, Hp:] + jnp.dot(m, wh_ref[...],
                                     preferred_element_type=jnp.float32)
        # Hp = 128 -> every gate slice is 128-lane aligned.
        i = jax.nn.sigmoid(gates[:, 0 * Hp:1 * Hp])
        f = jax.nn.sigmoid(gates[:, 1 * Hp:2 * Hp])
        o = jax.nn.sigmoid(gates[:, 2 * Hp:3 * Hp])
        u = jnp.tanh(gates[:, 3 * Hp:4 * Hp])
        c_new = f * c + i * u
        h_new = o * jnp.tanh(c_new)
        valid = (blk * Tc + tt) < T              # mask padded timesteps
        return jnp.where(valid, h_new, h), jnp.where(valid, c_new, c)

    h, c = jax.lax.fori_loop(0, Tc, step, (h_scr[...], c_scr[...]),
                             unroll=True)
    h_scr[...] = h
    c_scr[...] = c

    # Final-block only: write (h_n, c_n) and run the regressor head once.
    # TODO(synk): Dropout(0.25) is treated as inference-mode identity.
    @pl.when(blk == pl.num_programs(0) - 1)
    def _():
        h_out_ref[0] = h
        c_out_ref[0] = c
        z = jnp.maximum(
            jnp.dot(h, w1_ref[...], preferred_element_type=jnp.float32)
            + b1_ref[...], 0.0)
        y_ref[...] = jax.nn.sigmoid(
            jnp.dot(z, w2_ref[...], preferred_element_type=jnp.float32)
            + b2_ref[...])


# ---------------------------------------------------------------------------
# One-time parameter preparation (padding / fusion / bf16 cast).
# Call once, reuse across forwards.
# ---------------------------------------------------------------------------
def _pad_gates_cols(a, H, Hp, n_gates):
    """(R, n_gates*H) -> (R, n_gates*Hp): each gate block lane-aligned."""
    R = a.shape[0]
    a = a.reshape(R, n_gates, H)
    a = jnp.pad(a, ((0, 0), (0, 0), (0, Hp - H)))
    return a.reshape(R, n_gates * Hp)


def prepare_params(params, proj_dtype=None):
    H = params["wmh_t"].shape[0]
    I = params["wmx_t"].shape[0]
    Hp = _round_up(H, 128)
    if proj_dtype is None:
        # bf16 MXU operands for the big streaming matmul (v6e/v7x native path,
        # matmul-only win on v5e); exact f32 for small inputs.
        proj_dtype = jnp.bfloat16 if I >= 1024 else jnp.float32
    max_tk = 2048 if proj_dtype == jnp.bfloat16 else 1024
    tk, K_pad = _pick_k_tile(I, max_tk)

    # Fused projection weight [Wmx^T | Wx^T] -> (K_pad, 5Hp), cast once.
    wmx_p = jnp.pad(params["wmx_t"], ((0, 0), (0, Hp - H)))            # (I, Hp)
    wx_p = _pad_gates_cols(params["wx_t"], H, Hp, 4)                   # (I, 4Hp)
    w_comb = jnp.concatenate([wmx_p, wx_p], axis=1)                    # (I, 5Hp)
    if K_pad != I:
        w_comb = jnp.pad(w_comb, ((0, K_pad - I), (0, 0)))
    w_comb = w_comb.astype(proj_dtype)

    # Biases folded into the projection output: [bmx | bx+bh].
    bmx_p = jnp.pad(params["bmx"], ((0, 0), (0, Hp - H)))              # (1, Hp)
    bxh_p = _pad_gates_cols(params["bx"] + params["bh"], H, Hp, 4)     # (1, 4Hp)
    proj_bias = jnp.concatenate([bmx_p, bxh_p], axis=1)                # (1, 5Hp)

    wmh_p = jnp.pad(params["wmh_t"], ((0, Hp - H), (0, Hp - H)))       # (Hp, Hp)
    wh_p = jnp.pad(_pad_gates_cols(params["wh_t"], H, Hp, 4),
                   ((0, Hp - H), (0, 0)))                              # (Hp, 4Hp)
    bmh_p = jnp.pad(params["bmh"], ((0, 0), (0, Hp - H)))              # (1, Hp)

    w1_p = jnp.pad(params["w1_t"], ((0, Hp - H), (0, 128 - 16)))       # (Hp, 128)
    b1_p = jnp.pad(params["b1"], ((0, 0), (0, 128 - 16)))              # (1, 128)
    w2_p = jnp.pad(params["w2_t"], ((0, 128 - 16), (0, 128 - 2)))      # (128,128)
    b2_p = jnp.pad(params["b2"], ((0, 0), (0, 128 - 2)))               # (1, 128)

    return dict(H=H, I=I, Hp=Hp, proj_tk=tk,
                w_comb=w_comb, proj_bias=proj_bias,
                wmh=wmh_p, wh=wh_p, bmh=bmh_p,
                w1=w1_p, b1=b1_p, w2=w2_p, b2=b2_p)


# ---------------------------------------------------------------------------
# Wrapper
# ---------------------------------------------------------------------------
def timeseries_model_forward(x, prepared, time_block=32):
    """x: (T, B, I) float32. `prepared` = prepare_params(params).
    Returns ((h_n, c_n), y)."""
    T, B, I = x.shape
    H, Hp, tk = prepared["H"], prepared["Hp"], prepared["proj_tk"]

    # Stage 1: hoisted + fused input projections (+ biases) for the sequence.
    proj = _projection_matmul(x.reshape(T * B, I), prepared["w_comb"],
                              prepared["proj_bias"], tk)          # (T*B, 5Hp)
    proj = proj.reshape(T, B, 5 * Hp)                             # free reshape

    # Stage 2: time-blocked recurrence reading the fused projection directly.
    Tc = min(T, time_block)
    T_pad = _round_up(T, Tc)
    if T_pad != T:
        proj = jnp.pad(proj, ((0, T_pad - T), (0, 0), (0, 0)))

    full = lambda shape: pl.BlockSpec(shape, lambda b: (0,) * len(shape))

    h_out, c_out, y_pad = pl.pallas_call(
        functools.partial(_mlstm_rec_kernel, Hp, Tc, T),
        out_shape=[jax.ShapeDtypeStruct((1, B, Hp), jnp.float32),
                   jax.ShapeDtypeStruct((1, B, Hp), jnp.float32),
                   jax.ShapeDtypeStruct((B, 128), jnp.float32)],
        grid_spec=pltpu.PrefetchScalarGridSpec(
            num_scalar_prefetch=0,
            grid=(T_pad // Tc,),
            in_specs=[
                pl.BlockSpec((Tc, B, 5 * Hp), lambda b: (b, 0, 0)),  # proj blk
                full((Hp, Hp)), full((1, Hp)),                       # Wmh, bmh
                full((Hp, 4 * Hp)),                                  # Wh
                full((Hp, 128)), full((1, 128)),                     # W1, b1
                full((128, 128)), full((1, 128)),                    # W2, b2
            ],
            out_specs=[
                pl.BlockSpec((1, B, Hp), lambda b: (0, 0, 0)),
                pl.BlockSpec((1, B, Hp), lambda b: (0, 0, 0)),
                pl.BlockSpec((B, 128), lambda b: (0, 0)),
            ],
            scratch_shapes=[pltpu.VMEM((B, Hp), jnp.float32),
                            pltpu.VMEM((B, Hp), jnp.float32)]),
        compiler_params=pltpu.CompilerParams(
            dimension_semantics=("arbitrary",)),
    )(proj, prepared["wmh"], prepared["bmh"], prepared["wh"],
      prepared["w1"], prepared["b1"], prepared["w2"], prepared["b2"])

    h_n = h_out[:, :, :H]
    c_n = c_out[:, :, :H]
    y = y_pad[:, :2]
    return (h_n, c_n), y


# ---------------------------------------------------------------------------
# Params + pure-JAX reference
# ---------------------------------------------------------------------------
def init_params(key, I, H):
    ks = jax.random.split(key, 12)
    s = 0.1
    return {
        # stored pre-transposed so the kernels do x @ W (PyTorch: x @ W^T)
        "wx_t":  s * jax.random.normal(ks[0], (I, 4 * H), jnp.float32),
        "bx":    s * jax.random.normal(ks[1], (1, 4 * H), jnp.float32),
        "wh_t":  s * jax.random.normal(ks[2], (H, 4 * H), jnp.float32),
        "bh":    s * jax.random.normal(ks[3], (1, 4 * H), jnp.float32),
        "wmx_t": s * jax.random.normal(ks[4], (I, H), jnp.float32),
        "bmx":   s * jax.random.normal(ks[5], (1, H), jnp.float32),
        "wmh_t": s * jax.random.normal(ks[6], (H, H), jnp.float32),
        "bmh":   s * jax.random.normal(ks[7], (1, H), jnp.float32),
        "w1_t":  s * jax.random.normal(ks[8], (H, 16), jnp.float32),
        "b1":    s * jax.random.normal(ks[9], (1, 16), jnp.float32),
        "w2_t":  s * jax.random.normal(ks[10], (16, 2), jnp.float32),
        "b2":    s * jax.random.normal(ks[11], (1, 2), jnp.float32),
    }


def reference_forward(x, p):
    T, B, I = x.shape
    H = p["wmh_t"].shape[0]
    h = jnp.zeros((B, H), jnp.float32)
    c = jnp.zeros((B, H), jnp.float32)
    for t in range(T):
        xt = x[t]
        m = (xt @ p["wmx_t"] + p["bmx"][0]) * (h @ p["wmh_t"] + p["bmh"][0])
        g = xt @ p["wx_t"] + p["bx"][0] + m @ p["wh_t"] + p["bh"][0]
        i = jax.nn.sigmoid(g[:, 0*H:1*H]); f = jax.nn.sigmoid(g[:, 1*H:2*H])
        o = jax.nn.sigmoid(g[:, 2*H:3*H]); u = jnp.tanh(g[:, 3*H:4*H])
        c = f * c + i * u
        h = o * jnp.tanh(c)
    z = jnp.maximum(h @ p["w1_t"] + p["b1"][0], 0.0)
    y = jax.nn.sigmoid(z @ p["w2_t"] + p["b2"][0])
    return h[None], c[None], y


if __name__ == "__main__":
    key = jax.random.PRNGKey(0)

    # Test 1: small shapes, exact f32 path, single time block.
    T, B, I, H = 8, 2, 32, 32
    kx, kp, k3 = jax.random.split(key, 3)
    x = jax.random.normal(kx, (T, B, I), jnp.float32)
    params = init_params(kp, I, H)
    prepared = prepare_params(params)          # hoisted: prepared once, reused

    (h_n, c_n), y = timeseries_model_forward(x, prepared)
    jax.block_until_ready((h_n, c_n, y))
    h_ref, c_ref, y_ref = reference_forward(x, params)
    assert jnp.allclose(h_n, h_ref, atol=1e-5), "h_n mismatch"
    assert jnp.allclose(c_n, c_ref, atol=1e-5), "c_n mismatch"
    assert jnp.allclose(y, y_ref, atol=1e-5), "regressor output mismatch"

    # Test 2: T not a multiple of the time block -> exercises the multi-block
    # grid and the padded-timestep masking path (same prepared params reused).
    T2 = 20
    kx2, _ = jax.random.split(kx)
    x2 = jax.random.normal(kx2, (T2, B, I), jnp.float32)
    (h_n2, c_n2), y2 = timeseries_model_forward(x2, prepared, time_block=8)
    jax.block_until_ready((h_n2, c_n2, y2))
    h_ref2, c_ref2, y_ref2 = reference_forward(x2, params)
    assert jnp.allclose(h_n2, h_ref2, atol=1e-5), "h_n mismatch (T=20)"
    assert jnp.allclose(c_n2, c_ref2, atol=1e-5), "c_n mismatch (T=20)"
    assert jnp.allclose(y2, y_ref2, atol=1e-5), "regressor mismatch (T=20)"

    # Test 3: larger input size -> exercises the bf16 streaming-projection path
    # (the configuration used at the real size I=37888, H=100). Relaxed
    # tolerance for bf16 MXU operands with f32 accumulation.
    T3, B3, I3, H3 = 8, 2, 1024, 100
    kp3, kx3 = jax.random.split(k3)
    params3 = init_params(kp3, I3, H3)
    prepared3 = prepare_params(params3)        # -> bf16 w_comb, tk=1024
    x3 = 0.05 * jax.random.normal(kx3, (T3, B3, I3), jnp.float32)
    (h_n3, c_n3), y3 = timeseries_model_forward(x3, prepared3)
    jax.block_until_ready((h_n3, c_n3, y3))
    h_ref3, c_ref3, y_ref3 = reference_forward(x3, params3)
    assert jnp.allclose(h_n3, h_ref3, atol=2e-2), "h_n mismatch (bf16 path)"
    assert jnp.allclose(c_n3, c_ref3, atol=2e-2), "c_n mismatch (bf16 path)"
    assert jnp.allclose(y3, y_ref3, atol=2e-2), "regressor mismatch (bf16 path)"

    print("KERNEL_OK")
</pallas_src>

<mosaic_0001>
module attributes {stable_mosaic.version = 11 : i64} {
  func.func @_proj_matmul_kernel(%arg0: i32, %arg1: i32, %arg2: memref<16x32xf32, #tpu.memory_space<vmem>>, %arg3: memref<32x640xf32, #tpu.memory_space<vmem>>, %arg4: memref<1x640xf32, #tpu.memory_space<vmem>>, %arg5: memref<16x640xf32, #tpu.memory_space<vmem>>) attributes {dimension_semantics = [#tpu.dimension_semantics<parallel>, #tpu.dimension_semantics<arbitrary>], iteration_bounds = array<i64: 1, 1>, scalar_prefetch = 0 : i64, scratch_operands = 0 : i64, tpu.core_type = #tpu.core_type<tc>, window_params = [{transform_indices = @transform_0, window_bounds = array<i64: 16, 32>}, {transform_indices = @transform_1, window_bounds = array<i64: 32, 640>}, {pipeline_mode = #tpu.pipeline_mode<synchronous>, transform_indices = @transform_2, window_bounds = array<i64: 1, 640>}, {transform_indices = @transform_3, window_bounds = array<i64: 16, 640>}]} {
    %c0_i32 = arith.constant 0 : i32
    %0 = arith.cmpi eq, %arg1, %c0_i32 : i32
    %1 = arith.extui %0 : i1 to i32
    %c0_i32_0 = arith.constant 0 : i32
    %2 = arith.cmpi ne, %1, %c0_i32_0 : i32
    scf.if %2 {
      %c0_8 = arith.constant 0 : index
      %c0_9 = arith.constant 0 : index
      %9 = vector.load %arg4[%c0_8, %c0_9] : memref<1x640xf32, #tpu.memory_space<vmem>>, vector<1x640xf32>
      %10 = vector.shape_cast %9 : vector<1x640xf32> to vector<1x640xf32>
      %11 = vector.broadcast %10 : vector<1x640xf32> to vector<16x640xf32>
      %c0_10 = arith.constant 0 : index
      %c0_11 = arith.constant 0 : index
      %12 = vector.load %arg5[%c0_10, %c0_11] : memref<16x640xf32, #tpu.memory_space<vmem>>, vector<16x640xf32>
      tpu.vector_store %arg5[%c0_10, %c0_11], %11 {strides = array<i32>} : memref<16x640xf32, #tpu.memory_space<vmem>>, vector<16x640xf32>,
    } else {
    }
    %c0 = arith.constant 0 : index
    %c0_1 = arith.constant 0 : index
    %3 = vector.load %arg2[%c0, %c0_1] : memref<16x32xf32, #tpu.memory_space<vmem>>, vector<16x32xf32>
    %c0_2 = arith.constant 0 : index
    %c0_3 = arith.constant 0 : index
    %4 = vector.load %arg5[%c0_2, %c0_3] : memref<16x640xf32, #tpu.memory_space<vmem>>, vector<16x640xf32>
    %c0_4 = arith.constant 0 : index
    %c0_5 = arith.constant 0 : index
    %5 = vector.load %arg3[%c0_4, %c0_5] : memref<32x640xf32, #tpu.memory_space<vmem>>, vector<32x640xf32>
    %cst = arith.constant dense<0.000000e+00> : vector<16x640xf32>
    %6 = tpu.matmul %3, %5, %cst {dimension_numbers = #tpu.dot_dimension_numbers<[1], [0], [0], [1], [0, 0, 1, 1], [], []>} : vector<16x32xf32>, vector<32x640xf32>, vector<16x640xf32> -> vector<16x640xf32>
    %7 = arith.addf %4, %6 : vector<16x640xf32>
    %c0_6 = arith.constant 0 : index
    %c0_7 = arith.constant 0 : index
    %8 = vector.load %arg5[%c0_6, %c0_7] : memref<16x640xf32, #tpu.memory_space<vmem>>, vector<16x640xf32>
    tpu.vector_store %arg5[%c0_6, %c0_7], %7 {strides = array<i32>} : memref<16x640xf32, #tpu.memory_space<vmem>>, vector<16x640xf32>,
    return
  }
  func.func @transform_0(%arg0: i32, %arg1: i32) -> (i32, i32) {
    %c0_i32 = arith.constant 0 : i32
    return %arg0, %arg1 : i32, i32
  }
  func.func @transform_1(%arg0: i32, %arg1: i32) -> (i32, i32) {
    %c0_i32 = arith.constant 0 : i32
    %c0_i32_0 = arith.constant 0 : i32
    return %arg1, %c0_i32 : i32, i32
  }
  func.func @transform_2(%arg0: i32, %arg1: i32) -> (i32, i32) {
    %c0_i32 = arith.constant 0 : i32
    %c0_i32_0 = arith.constant 0 : i32
    %c0_i32_1 = arith.constant 0 : i32
    return %c0_i32, %c0_i32_0 : i32, i32
  }
  func.func @transform_3(%arg0: i32, %arg1: i32) -> (i32, i32) {
    %c0_i32 = arith.constant 0 : i32
    %c0_i32_0 = arith.constant 0 : i32
    return %arg0, %c0_i32 : i32, i32
  }
}

</mosaic_0001>

<bundles_post_ra>
// kernel: tpu_custom_call.1
= control target key start
LH: loop header
LB: loop body
LE: loop exit
PB: predicated region body
PF: predicated region fallthrough
CT: control target
= control target key end

     0   :  { %8 = vsyncpa [#allocation3], 0  ;;  %s460_s0 = inlined_call_operand.hbm [shape: f32[16,32], index: 0, kind: input, shape index: {}]   ;;  %s461_s1 = inlined_call_operand.hbm [shape: f32[32,640], index: 1, kind: input, shape index: {}]   ;;  %s462_s2 = inlined_call_operand.hbm [shape: f32[1,640], index: 2, kind: input, shape index: {}]   ;;  %s463_s3 = inlined_call_operand.hbm [shape: f32[16,640], index: 3, kind: output, shape index: {}]  }
   0x1   :  { %9 = vsyncpa [#allocation6], 0  ;;  %s28_s14 = sshll.u32 %s461_s1, 4  ;;  %s29_s14 = int_to_ptr.hbm [resolvable:$true] %s28_s14 }
   0x2   :  { %10 = vsyncpa [#allocation4], 0  ;;  %s404_s15 = smov [#allocation5]   ;;  %s15_s19 = sshll.u32 %s460_s0, 4  ;;  %s16_s19 = int_to_ptr.hbm [resolvable:$true] %s15_s19 }
   0x3   :  { %s30_s16 = sshll.u32 %s404_s15, 4  ;;  %s405_s20 = smov 640   ;;  %s31_s16 = int_to_ptr.vmem [resolvable:$true] %s30_s16 }
   0x4   :  { %s406_s21 = smov 40   ;;  %s407_s22 = smov [#allocation2]  }
   0x5   :  { %36 = dma.hbm_to_vmem [thread:$0]  %s29_s14, 2560, %s31_s16, [#allocation6], %s405_s20, %s405_s20, %s406_s21  }
   0x6   :  { %s17_s23 = sshll.u32 %s407_s22, 4  ;;  %s408_s1 = smov 128   ;;  %s18_s23 = int_to_ptr.vmem [resolvable:$true] %s17_s23 }
   0x7   :  { %s409_s24 = smov 8   ;;  %s42_s27 = sshll.u32 %s462_s2, 4  ;;  %s43_s27 = int_to_ptr.hbm [resolvable:$true] %s42_s27 }
   0x8   :  { %23 = dma.hbm_to_vmem [thread:$0]  %s16_s19, 256, %s18_s23, [#allocation3], %s408_s1, %s408_s1, %s409_s24  }
   0x9   :  { %s410_s28 = smov [#allocation7]  }
   0xa   :  { %s44_s0 = sshll.u32 %s410_s28, 4  ;;  %s45_s0 = int_to_ptr.vmem [resolvable:$true] %s44_s0 }
   0xb   :  { %47 = dma.hbm_to_vmem [thread:$0]  %s43_s27, 80, %s45_s0, [#allocation6]  }
   0xc   :  { %398 = dma.done.wait [#allocation3], 256  }
   0xd   :  { %399 = vsyncadd [#allocation3], 4294967040 }
   0xe   :  { %400 = dma.done.wait [#allocation6], 2640  }
   0xf   :  { %401 = vsyncadd [#allocation6], 4294964656  ;;  %v113_v0 = vld [vmem:[#allocation5 + $0x78] sm:$0xff]  ;;  %v108_v1 = vld [vmem:[#allocation5 + $0x50] sm:$0xff]  ;;  %vm118_vm0 = vcmask 261120   ;;  %s411_s2 = smov [#allocation8]  }
  0x10   :  { %v115_v2 = vld [vmem:[#allocation5 + $0x88] sm:$0xff]  ;;  %137 = vmatpush.msra.mxu0 %v113_v0  ;;  %290 = vmatpush.msra.mxu1 %v113_v0  ;;  %v116_v3 = vld [vmem:[#allocation5 + $0x90] sm:$0xff]  ;;  %v110_v4 = vld [vmem:[#allocation5 + $0x60] sm:$0xff]  ;;  %s264_s29 = sshll.u32 %s411_s2, 4  ;;  %s266_s5 = sshll.u32 %s463_s3, 4  ;;  %s265_s29 = int_to_ptr.vmem [resolvable:$true] %s264_s29  ;;  %s267_s5 = int_to_ptr.hbm [resolvable:$true] %s266_s5 }
  0x11   :  { %183 = vmatpush.msra.mxu2 %v115_v2  ;;  %206 = vmatpush.msra.mxu3 %v116_v3  ;;  %v103_v5 = vld [vmem:[#allocation5 + $0x28] sm:$0xff]  ;;  %v105_v7 = vld [vmem:[#allocation5 + $0x38] sm:$0xff]  ;;  %v106_v8 = vld [vmem:[#allocation5 + $0x40] sm:$0xff] }
  0x12   :  { %v111_v6 = vld [vmem:[#allocation5 + $0x68] sm:$0xff]  ;;  %138 = vmatpush.msra.mxu0 %v108_v1  ;;  %291 = vmatpush.msra.mxu1 %v108_v1  ;;  %v98_v9 = vld [vmem:[#allocation5] sm:$0xff]  ;;  %v86_v10 = vld [vmem:[#allocation2] sm:$0xff] }
  0x13   :  { %184 = vmatpush.msra.mxu2 %v110_v4  ;;  %207 = vmatpush.msra.mxu3 %v111_v6  ;;  %v87_v11 = vld [vmem:[#allocation2 + $0x8] sm:$0xff]  ;;  %v114_v12 = vld [vmem:[#allocation5 + $0x80] sm:$0xff]  ;;  %v100_v14 = vld [vmem:[#allocation5 + $0x10] sm:$0xff] }
  0x14   :  { %139 = vmatpush.msra.mxu0 %v103_v5  ;;  %292 = vmatpush.msra.mxu1 %v103_v5  ;;  %v117_v13 = vld [vmem:[#allocation5 + $0x98] sm:$0xff]  ;;  %v112_v17 = vld [vmem:[#allocation5 + $0x70] sm:$0xff]  ;;  %v107_v19 = vld [vmem:[#allocation5 + $0x48] sm:$0xff] }
  0x15   :  { %185 = vmatpush.msra.mxu2 %v105_v7  ;;  %208 = vmatpush.msra.mxu3 %v106_v8  ;;  %v101_v15 = vld [vmem:[#allocation5 + $0x18] sm:$0xff]  ;;  %v104_v18 = vld [vmem:[#allocation5 + $0x30] sm:$0xff]  ;;  %v99_v20 = vld [vmem:[#allocation5 + $0x8] sm:$0xff] }
  0x16   :  { %140 = vmatpush.msra.mxu0 %v98_v9  ;;  %293 = vmatpush.msra.mxu1 %v98_v9  ;;  %v109_v16 = vld [vmem:[#allocation5 + $0x58] sm:$0xff]  ;;  %v102_v21 = vld [vmem:[#allocation5 + $0x20] sm:$0xff] }
  0x17   :  { %280 = vmatmul.msk.f32.vlgmr.msra.gmra.mxu0 %vm118_vm0, %v86_v10  ;;  %281 = vmatmul.msk.f32.vlgmr.msra.gmra.mxu1 %vm118_vm0, %v87_v11  ;;  %v64_v22 = vld [vmem:[#allocation7] sm:$0x1f] }
  0x18   :  { %160 = vmatpush.msrb.mxu1 %v114_v12  ;;  %229 = vmatpush.msrb.mxu0 %v117_v13  ;;  %v66_v23 = vperm.slane %v64_v22, 0  ;;  %v67_v28 = vperm.slane %v64_v22, 1  ;;  %v68_v29 = vperm.slane %v64_v22, 2  ;;  %v70_v30 = vperm.slane %v64_v22, 4 }
  0x19   :  { %186 = vmatpush.msra.mxu2 %v100_v14  ;;  %209 = vmatpush.msra.mxu3 %v101_v15  ;;  %v69_v31 = vperm.slane %v64_v22, 3 }
  0x1a   :  { %161 = vmatpush.msrb.mxu1 %v109_v16  ;;  %284 = vmatmul.msk.f32.vlgmr.msra.gmra.mxu2 %vm118_vm0, %v86_v10 }
  0x1b   :  { %286 = vmatmul.msk.f32.vlgmr.msra.gmra.mxu3 %vm118_vm0, %v86_v10  ;;  %230 = vmatpush.msrb.mxu0 %v112_v17 }
  0x1c   :  { %162 = vmatpush.msrb.mxu1 %v104_v18 }
  0x1d   :  { %231 = vmatpush.msrb.mxu0 %v107_v19 }
  0x1e   :  { %163 = vmatpush.msrb.mxu1 %v99_v20 }
  0x1f   :  { %232 = vmatpush.msrb.mxu0 %v102_v21  ;;  %282 = vmatmul.msk.f32.vlgmr.msrb.gmra.mxu1 %vm118_vm0, %v86_v10 }
  0x20   :  { %288 = vmatmul.msk.f32.vlgmr.msrb.gmra.mxu0 %vm118_vm0, %v86_v10 }
  0x22   :  { %285 = vmatmul.msk.f32.gmra.mxu2 %vm118_vm0, %v87_v11 }
  0x23   :  { %287 = vmatmul.msk.f32.gmra.mxu3 %vm118_vm0, %v87_v11 }
  0x27   :  { %283 = vmatmul.msk.f32.gmra.mxu1 %vm118_vm0, %v87_v11 }
  0x28   :  { %289 = vmatmul.msk.f32.gmra.mxu0 %vm118_vm0, %v87_v11 }
  0x94   :  { %v142_v24 = vpop.f32.mrf.mxu0  ;;  %v145_v25 = vpop.f32.mrf.mxu1 }
  0x95   :  { %v240_v26 = vadd.f32 %v142_v24, %v66_v23  ;;  %v245_v27 = vadd.f32 %v145_v25, %v66_v23 }
  0x97   :  { %250 = vst [vmem:[#allocation8] sm:$0xff] %v240_v26 }
  0x98   :  { %255 = vst [vmem:[#allocation8 + $0x28] sm:$0xff] %v245_v27 }
  0x9c   :  { %v165_v32 = vpop.f32.mrf.mxu1 }
  0x9d   :  { %v241_v33 = vadd.f32 %v165_v32, %v67_v28  ;;  %v188_v34 = vpop.f32.mrf.mxu2  ;;  %v234_v35 = vpop.f32.mrf.mxu0 }
  0x9e   :  { %v242_v36 = vadd.f32 %v188_v34, %v68_v29  ;;  %v211_v37 = vpop.f32.mrf.mxu3  ;;  %v244_v38 = vadd.f32 %v234_v35, %v70_v30 }
  0x9f   :  { %251 = vst [vmem:[#allocation8 + $0x8] sm:$0xff] %v241_v33  ;;  %v243_v39 = vadd.f32 %v211_v37, %v69_v31 }
  0xa0   :  { %252 = vst [vmem:[#allocation8 + $0x10] sm:$0xff] %v242_v36 }
  0xa1   :  { %253 = vst [vmem:[#allocation8 + $0x18] sm:$0xff] %v243_v39 }
  0xa2   :  { %254 = vst [vmem:[#allocation8 + $0x20] sm:$0xff] %v244_v38 }
  0xa4   :  { %v168_v40 = vpop.f32.mrf.mxu1 }
  0xa5   :  { %v246_v41 = vadd.f32 %v168_v40, %v67_v28  ;;  %v191_v42 = vpop.f32.mrf.mxu2  ;;  %v237_v43 = vpop.f32.mrf.mxu0 }
  0xa6   :  { %v247_v44 = vadd.f32 %v191_v42, %v68_v29  ;;  %v214_v45 = vpop.f32.mrf.mxu3  ;;  %v249_v46 = vadd.f32 %v237_v43, %v70_v30 }
  0xa7   :  { %256 = vst [vmem:[#allocation8 + $0x30] sm:$0xff] %v246_v41  ;;  %v248_v47 = vadd.f32 %v214_v45, %v69_v31 }
  0xa8   :  { %257 = vst [vmem:[#allocation8 + $0x38] sm:$0xff] %v247_v44 }
  0xa9   :  { %258 = vst [vmem:[#allocation8 + $0x40] sm:$0xff] %v248_v47 }
  0xaa   :  { %259 = vst [vmem:[#allocation8 + $0x48] sm:$0xff] %v249_v46 }
  0xab   :  { %272 = dma.vmem_to_hbm [thread:$0]  %s265_s29, 1280, %s267_s5, [#allocation4], %s405_s20, %s405_s20, %s406_s21  }
  0xac   :  { %402 = dma.done.wait [#allocation4], 1280  }
  0xad   :  { %403 = vsyncadd [#allocation4], 4294966016 }
  0xae   :  { %277 = vsyncpa [#allocation3], 1 }
  0xaf   :  { %278 = vsyncpa [#allocation6], 1 }
  0xb0   :  { %279 = vsyncpa [#allocation4], 1 }

</bundles_post_ra>
